<compile_context>
chip_gen: v6e
topology: v6e:2x2x1
jax: 0.10.0
libtpu: 0.0.40
codegen_flags: <defaults>
</compile_context>

<pallas_src>
import jax
import jax.numpy as jnp
from jax import lax
from jax.experimental import pallas as pl
from jax.experimental.pallas import tpu as pltpu

N_INPUTS = 10
D = 7           # feature dim of nn.Linear(7, 7)
_SLOT_W = 10    # slab slot holding the weight
_SLOT_B = 11    # slab slot holding the bias (row 0 and column 0)

# dot_general dimension numbers contracting the LAST axis of both operands,
# i.e. result = A @ B^T for 2-D A, B.  Avoids any materialized transpose.
_DN_NT = (((1,), (1,)), ((), ()))


def _fused_linear_permute_kernel(slab_ref, o_ref, lhs_ref):
    # slab_ref: (12, 7, 7) — [x1..x10, W, bias-tile]
    # lhs_ref : (16, 7) f32 VMEM scratch for the batched "@ W^T" pass.
    w = slab_ref[_SLOT_W]                      # (7, 7)
    b_tile = slab_ref[_SLOT_B]                 # (7, 7): row 0 = bias, col 0 = bias
    b_row = b_tile[0:1, :]                     # (1, 7) broadcasts over output rows
    b_col = b_tile[:, 0:1]                     # (7, 1) broadcasts over output cols

    # Group sums (VPU adds; MXU pushes drop from 15 -> 2).
    s_a = slab_ref[0] + slab_ref[1] + slab_ref[2] + slab_ref[3]               # single-linear group
    s_b = slab_ref[4] + slab_ref[5] + slab_ref[6] + slab_ref[7] + slab_ref[8]  # double-linear group

    # Stage both independent "@ W^T" operands into one sublane-aligned tile:
    # rows 0-6 = S_B, rows 8-14 = x10 (rows 7/15 zero and discarded).
    lhs_ref[...] = jnp.zeros_like(lhs_ref)
    lhs_ref[0:D, :] = s_b
    lhs_ref[8:8 + D, :] = slab_ref[9]

    # Batched pass 1: [S_B ; x10] @ W^T.
    p1 = lax.dot_general(lhs_ref[...], w, _DN_NT,
                         preferred_element_type=jnp.float32)
    t1 = p1[0:D, :] + 5.0 * b_row              # sum of first linears over x5..x9
    y10 = p1[8:8 + D, :] + b_row               # linear(x10), no permute

    # Pass 2 — combined transposed term:
    #   sum_A linear(x_i)^T + sum_B linear(linear(x_i))^T
    # = ((S_A + T1) @ W^T + 9b)^T = W @ (S_A + T1)^T + 9*b_col
    m = s_a + t1
    y_t = lax.dot_general(w, m, _DN_NT,
                          preferred_element_type=jnp.float32) + 9.0 * b_col

    o_ref[...] = (y_t + y10).astype(o_ref.dtype)


def fused_model_forward(weight, bias,
                        x1, x2, x3, x4, x5, x6, x7, x8, x9, x10):
    """Forward of the PyTorch Model.

    Argument order matters: x1..x4 take a single linear (permuted), x5..x9 a
    double linear (permuted), x10 a single linear (not permuted).
    weight: (7, 7); bias: (7,); each x_i: (1, 7, 7).
    """
    dtype = x1.dtype
    xs = jnp.stack([x1, x2, x3, x4, x5, x6, x7, x8, x9, x10], axis=0)
    x_stack = xs.reshape(N_INPUTS, D, D)

    # Parameter tiles: slot 10 = W; slot 11 has bias in row 0 AND column 0 so
    # the kernel gets both broadcast forms from one slice each (no in-kernel
    # transpose).
    param = jnp.zeros((2, D, D), dtype)
    param = param.at[0].set(weight.astype(dtype))
    param = param.at[1, 0, :].set(bias.astype(dtype))
    param = param.at[1, :, 0].set(bias.astype(dtype))

    # Single packed slab => exactly one input DMA + one output DMA.
    slab = jnp.concatenate([x_stack, param], axis=0)   # (12, 7, 7)

    out = pl.pallas_call(
        _fused_linear_permute_kernel,
        out_shape=jax.ShapeDtypeStruct((D, D), dtype),
        in_specs=[pl.BlockSpec(memory_space=pltpu.MemorySpace.VMEM)],
        out_specs=pl.BlockSpec(memory_space=pltpu.MemorySpace.VMEM),
        scratch_shapes=[pltpu.VMEM((16, D), jnp.float32)],
        cost_estimate=pl.CostEstimate(
            flops=2 * (16 * D * D + D * D * D) + 12 * D * D,
            transcendentals=0,
            bytes_accessed=(12 * D * D + D * D) * 4,
        ),
    )(slab)
    return out.reshape(1, D, D)


def _reference(xs, weight, bias):
    # Pure-JAX reference mirroring the PyTorch forward (per-input, no algebra).
    def lin(x):
        return jnp.einsum("bij,kj->bik", x, weight) + bias

    outs = []
    for i in range(N_INPUTS):
        y = lin(xs[i])
        if 4 <= i <= 8:          # x5..x9: linear applied twice
            y = lin(y)
        if i != 9:               # x1..x9 are permute(0, 2, 1)
            y = jnp.transpose(y, (0, 2, 1))
        outs.append(y)
    return sum(outs)


if __name__ == "__main__":
    key = jax.random.PRNGKey(0)
    kx, kw, kb = jax.random.split(key, 3)

    # 10 inputs of shape (1, 7, 7).
    xs = jax.random.normal(kx, (N_INPUTS, 1, D, D), dtype=jnp.float32)
    # Deterministic Linear(7, 7) params (PyTorch-style uniform init range).
    bound = 1.0 / (D ** 0.5)
    weight = jax.random.uniform(kw, (D, D), minval=-bound, maxval=bound,
                                dtype=jnp.float32)
    bias = jax.random.uniform(kb, (D,), minval=-bound, maxval=bound,
                              dtype=jnp.float32)

    out = fused_model_forward(weight, bias, *[xs[i] for i in range(N_INPUTS)])
    out = jax.block_until_ready(out)

    ref = _reference(xs, weight, bias)
    assert out.shape == (1, D, D)
    # Algebraic regrouping changes FP summation order -> allow a small tolerance.
    assert jnp.allclose(out, ref, atol=1e-4, rtol=1e-4), \
        float(jnp.max(jnp.abs(out - ref)))

    print("KERNEL_OK")
</pallas_src>

<mosaic_0001>
module attributes {stable_mosaic.version = 11 : i64} {
  func.func @_fused_linear_permute_kernel(%arg0: memref<12x7x7xf32, #tpu.memory_space<vmem>>, %arg1: memref<7x7xf32, #tpu.memory_space<vmem>>, %arg2: memref<16x7xf32, #tpu.memory_space<vmem>>) attributes {dimension_semantics = [], scalar_prefetch = 0 : i64, scratch_operands = 1 : i64, tpu.core_type = #tpu.core_type<tc>} {
    %c10 = arith.constant 10 : index
    %c0 = arith.constant 0 : index
    %c0_0 = arith.constant 0 : index
    %0 = vector.load %arg0[%c10, %c0, %c0_0] : memref<12x7x7xf32, #tpu.memory_space<vmem>>, vector<1x7x7xf32>
    %1 = vector.shape_cast %0 : vector<1x7x7xf32> to vector<7x7xf32>
    %c11 = arith.constant 11 : index
    %c0_1 = arith.constant 0 : index
    %c0_2 = arith.constant 0 : index
    %2 = vector.load %arg0[%c11, %c0_1, %c0_2] : memref<12x7x7xf32, #tpu.memory_space<vmem>>, vector<1x7x7xf32>
    %3 = vector.shape_cast %2 : vector<1x7x7xf32> to vector<7x7xf32>
    %4 = vector.extract_strided_slice %3 {offsets = [0, 0], sizes = [1, 7], strides = [1, 1]} : vector<7x7xf32> to vector<1x7xf32>
    %5 = vector.extract_strided_slice %3 {offsets = [0, 0], sizes = [7, 1], strides = [1, 1]} : vector<7x7xf32> to vector<7x1xf32>
    %c0_3 = arith.constant 0 : index
    %c0_4 = arith.constant 0 : index
    %c0_5 = arith.constant 0 : index
    %6 = vector.load %arg0[%c0_3, %c0_4, %c0_5] : memref<12x7x7xf32, #tpu.memory_space<vmem>>, vector<1x7x7xf32>
    %7 = vector.shape_cast %6 : vector<1x7x7xf32> to vector<7x7xf32>
    %c1 = arith.constant 1 : index
    %c0_6 = arith.constant 0 : index
    %c0_7 = arith.constant 0 : index
    %8 = vector.load %arg0[%c1, %c0_6, %c0_7] : memref<12x7x7xf32, #tpu.memory_space<vmem>>, vector<1x7x7xf32>
    %9 = vector.shape_cast %8 : vector<1x7x7xf32> to vector<7x7xf32>
    %10 = arith.addf %7, %9 : vector<7x7xf32>
    %c2 = arith.constant 2 : index
    %c0_8 = arith.constant 0 : index
    %c0_9 = arith.constant 0 : index
    %11 = vector.load %arg0[%c2, %c0_8, %c0_9] : memref<12x7x7xf32, #tpu.memory_space<vmem>>, vector<1x7x7xf32>
    %12 = vector.shape_cast %11 : vector<1x7x7xf32> to vector<7x7xf32>
    %13 = arith.addf %10, %12 : vector<7x7xf32>
    %c3 = arith.constant 3 : index
    %c0_10 = arith.constant 0 : index
    %c0_11 = arith.constant 0 : index
    %14 = vector.load %arg0[%c3, %c0_10, %c0_11] : memref<12x7x7xf32, #tpu.memory_space<vmem>>, vector<1x7x7xf32>
    %15 = vector.shape_cast %14 : vector<1x7x7xf32> to vector<7x7xf32>
    %16 = arith.addf %13, %15 : vector<7x7xf32>
    %c4 = arith.constant 4 : index
    %c0_12 = arith.constant 0 : index
    %c0_13 = arith.constant 0 : index
    %17 = vector.load %arg0[%c4, %c0_12, %c0_13] : memref<12x7x7xf32, #tpu.memory_space<vmem>>, vector<1x7x7xf32>
    %18 = vector.shape_cast %17 : vector<1x7x7xf32> to vector<7x7xf32>
    %c5 = arith.constant 5 : index
    %c0_14 = arith.constant 0 : index
    %c0_15 = arith.constant 0 : index
    %19 = vector.load %arg0[%c5, %c0_14, %c0_15] : memref<12x7x7xf32, #tpu.memory_space<vmem>>, vector<1x7x7xf32>
    %20 = vector.shape_cast %19 : vector<1x7x7xf32> to vector<7x7xf32>
    %21 = arith.addf %18, %20 : vector<7x7xf32>
    %c6 = arith.constant 6 : index
    %c0_16 = arith.constant 0 : index
    %c0_17 = arith.constant 0 : index
    %22 = vector.load %arg0[%c6, %c0_16, %c0_17] : memref<12x7x7xf32, #tpu.memory_space<vmem>>, vector<1x7x7xf32>
    %23 = vector.shape_cast %22 : vector<1x7x7xf32> to vector<7x7xf32>
    %24 = arith.addf %21, %23 : vector<7x7xf32>
    %c7 = arith.constant 7 : index
    %c0_18 = arith.constant 0 : index
    %c0_19 = arith.constant 0 : index
    %25 = vector.load %arg0[%c7, %c0_18, %c0_19] : memref<12x7x7xf32, #tpu.memory_space<vmem>>, vector<1x7x7xf32>
    %26 = vector.shape_cast %25 : vector<1x7x7xf32> to vector<7x7xf32>
    %27 = arith.addf %24, %26 : vector<7x7xf32>
    %c8 = arith.constant 8 : index
    %c0_20 = arith.constant 0 : index
    %c0_21 = arith.constant 0 : index
    %28 = vector.load %arg0[%c8, %c0_20, %c0_21] : memref<12x7x7xf32, #tpu.memory_space<vmem>>, vector<1x7x7xf32>
    %29 = vector.shape_cast %28 : vector<1x7x7xf32> to vector<7x7xf32>
    %30 = arith.addf %27, %29 : vector<7x7xf32>
    %cst = arith.constant 0.000000e+00 : f32
    %31 = vector.broadcast %cst : f32 to vector<16x7xf32>
    %c0_22 = arith.constant 0 : index
    %c0_23 = arith.constant 0 : index
    %32 = vector.load %arg2[%c0_22, %c0_23] : memref<16x7xf32, #tpu.memory_space<vmem>>, vector<16x7xf32>
    tpu.vector_store %arg2[%c0_22, %c0_23], %31 {strides = array<i32>} : memref<16x7xf32, #tpu.memory_space<vmem>>, vector<16x7xf32>,
    %c0_24 = arith.constant 0 : index
    %c0_25 = arith.constant 0 : index
    %33 = vector.load %arg2[%c0_24, %c0_25] : memref<16x7xf32, #tpu.memory_space<vmem>>, vector<7x7xf32>
    tpu.vector_store %arg2[%c0_24, %c0_25], %30 {strides = array<i32>} : memref<16x7xf32, #tpu.memory_space<vmem>>, vector<7x7xf32>,
    %c9 = arith.constant 9 : index
    %c0_26 = arith.constant 0 : index
    %c0_27 = arith.constant 0 : index
    %34 = vector.load %arg0[%c9, %c0_26, %c0_27] : memref<12x7x7xf32, #tpu.memory_space<vmem>>, vector<1x7x7xf32>
    %35 = vector.shape_cast %34 : vector<1x7x7xf32> to vector<7x7xf32>
    %c8_28 = arith.constant 8 : index
    %c0_29 = arith.constant 0 : index
    %36 = vector.load %arg2[%c8_28, %c0_29] : memref<16x7xf32, #tpu.memory_space<vmem>>, vector<7x7xf32>
    tpu.vector_store %arg2[%c8_28, %c0_29], %35 {strides = array<i32>} : memref<16x7xf32, #tpu.memory_space<vmem>>, vector<7x7xf32>,
    %c0_30 = arith.constant 0 : index
    %c0_31 = arith.constant 0 : index
    %37 = vector.load %arg2[%c0_30, %c0_31] : memref<16x7xf32, #tpu.memory_space<vmem>>, vector<16x7xf32>
    %cst_32 = arith.constant dense<0.000000e+00> : vector<16x7xf32>
    %38 = tpu.matmul %37, %1, %cst_32 {dimension_numbers = #tpu.dot_dimension_numbers<[1], [1], [0], [0], [0, 0, 1, 0], [], []>} : vector<16x7xf32>, vector<7x7xf32>, vector<16x7xf32> -> vector<16x7xf32>
    %39 = vector.extract_strided_slice %38 {offsets = [0, 0], sizes = [7, 7], strides = [1, 1]} : vector<16x7xf32> to vector<7x7xf32>
    %cst_33 = arith.constant 5.000000e+00 : f32
    %40 = vector.broadcast %cst_33 : f32 to vector<1x7xf32>
    %41 = arith.mulf %40, %4 : vector<1x7xf32>
    %42 = vector.broadcast %41 : vector<1x7xf32> to vector<7x7xf32>
    %43 = arith.addf %39, %42 : vector<7x7xf32>
    %44 = vector.extract_strided_slice %38 {offsets = [8, 0], sizes = [7, 7], strides = [1, 1]} : vector<16x7xf32> to vector<7x7xf32>
    %45 = vector.broadcast %4 : vector<1x7xf32> to vector<7x7xf32>
    %46 = arith.addf %44, %45 : vector<7x7xf32>
    %47 = arith.addf %16, %43 : vector<7x7xf32>
    %cst_34 = arith.constant dense<0.000000e+00> : vector<7x7xf32>
    %48 = tpu.matmul %1, %47, %cst_34 {dimension_numbers = #tpu.dot_dimension_numbers<[1], [1], [0], [0], [0, 0, 1, 0], [], []>} : vector<7x7xf32>, vector<7x7xf32>, vector<7x7xf32> -> vector<7x7xf32>
    %cst_35 = arith.constant 9.000000e+00 : f32
    %49 = vector.broadcast %cst_35 : f32 to vector<7x1xf32>
    %50 = arith.mulf %49, %5 : vector<7x1xf32>
    %51 = vector.broadcast %50 : vector<7x1xf32> to vector<7x7xf32>
    %52 = arith.addf %48, %51 : vector<7x7xf32>
    %53 = arith.addf %52, %46 : vector<7x7xf32>
    %c0_36 = arith.constant 0 : index
    %c0_37 = arith.constant 0 : index
    %54 = vector.load %arg1[%c0_36, %c0_37] : memref<7x7xf32, #tpu.memory_space<vmem>>, vector<7x7xf32>
    tpu.vector_store %arg1[%c0_36, %c0_37], %53 {strides = array<i32>} : memref<7x7xf32, #tpu.memory_space<vmem>>, vector<7x7xf32>,
    return
  }
}

</mosaic_0001>

<bundles_post_ra>
// kernel: tpu_custom_call.1
= control target key start
LH: loop header
LB: loop body
LE: loop exit
PB: predicated region body
PF: predicated region fallthrough
CT: control target
= control target key end

     0   :  { %vm37_vm0 = vcmask 56320   ;;  %vm40_vm1 = vcmask 55296   ;;  %v296_v1 = vmov 0.0   ;;  %s360_s0 = inlined_call_operand.vmem [shape: f32[12,7,7], index: 0, kind: input, shape index: {}]   ;;  %s361_s1 = inlined_call_operand.hbm [shape: f32[7,7], index: 1, kind: output, shape index: {}]  }
   0x1   :  { %v238_v0 = vld [vmem:[%s360_s0 + $0x50] sm:$0x7f]  ;;  %38 = vst.msk [vmem:[#allocation2] sm:$0xff] %vm37_vm0, %v296_v1  ;;  %39 = vst.msk [vmem:[#allocation2 + $0x8] sm:$0xff] %vm37_vm0, %v296_v1  ;;  %v248_v2 = vld [vmem:[%s360_s0 + $0x48] sm:$0x7f]  ;;  %264 = vmatprep.subr.mxu1 %v296_v1 }
   0x2   :  { %259 = vmatprep.subr.msk.mxu0 %vm37_vm0, %v238_v0  ;;  %v243_v3 = vld [vmem:[%s360_s0 + $0x20] sm:$0x7f]  ;;  %v244_v4 = vld [vmem:[%s360_s0 + $0x28] sm:$0x7f]  ;;  %44 = vst.msk [vmem:[#allocation2 + $0x8] sm:$0x7f] %vm40_vm1, %v248_v2 }
   0x3   :  { %260 = vmatpush3.xpose.msk.msra.mxu0 %vm37_vm0, %v238_v0  ;;  %v27_v5 = vadd.f32 %v244_v4, %v243_v3  ;;  %v245_v6 = vld [vmem:[%s360_s0 + $0x30] sm:$0x7f]  ;;  %v246_v7 = vld [vmem:[%s360_s0 + $0x38] sm:$0x7f] }
   0x4   :  { %6 = vsyncpa [#allocation4], 0  ;;  %v247_v9 = vld [vmem:[%s360_s0 + $0x40] sm:$0x7f]  ;;  %v132_v14 = vlaneseq  ;;  %v239_v16 = vld [vmem:[%s360_s0 + $0x58] sm:$0x7f] }
   0x5   :  { %v30_v8 = vadd.f32 %v245_v6, %v27_v5  ;;  %vm297_vm2 = vmmov 0   ;;  %v143_v19 = vmul.f32 9.0, %v239_v16  ;;  %v298_v20 = vmov 0   ;;  %v13_v21 = vld [vmem:[%s360_s0] sm:$0x7f]  ;;  %s299_s30 = smov [#allocation3]  }
   0x6   :  { %v133_v15 = vshrl.u32 %v132_v14, 7  ;;  %266 = vmatprep.mubr.msk.f32.mxu1 %vm297_vm2, %v296_v1  ;;  %273 = vset.pattern.permute.xlu0 %v298_v20  ;;  %v240_v22 = vld [vmem:[%s360_s0 + $0x8] sm:$0x7f]  ;;  %v241_v24 = vld [vmem:[%s360_s0 + $0x10] sm:$0x7f]  ;;  %v131_v25 = vmul.f32 5.0, %v239_v16 }
   0x7   :  { %v33_v10 = vadd.f32 %v246_v7, %v30_v8  ;;  %146 = vperm.xlu0 %273, %v143_v19   ;;  %v16_v23 = vadd.f32 %v240_v22, %v13_v21  ;;  %v242_v27 = vld [vmem:[%s360_s0 + $0x18] sm:$0x7f]  ;;  %s230_s2 = sshll.u32 %s299_s30, 4  ;;  %s231_s2 = int_to_ptr.vmem [resolvable:$true] %s230_s2 }
   0x8   :  { %v134_v17 = vsub.s32 0, %v133_v15  ;;  %s274_s0 = scalar_lea.vmem %s231_s2, 128  ;;  %p279_p1 = scmp.lt.s32.totalorder %s231_s2, %s231_s2 }
   0x9   :  { %v36_v11 = vadd.f32 %v247_v9, %v33_v10  ;;  %v46_v12 = vld [vmem:[#allocation2 + $0x8] sm:$0xff]  ;;  %v19_v26 = vadd.f32 %v241_v24, %v16_v23  ;;  %p275_p0 = scmp.ne.s32.totalorder %s231_s2, %s274_s0  ;;  %p280_p2 = scmp.lt.s32.totalorder %s274_s0, %s274_s0 }
   0xa   :  { %v140_v18 = vrot.slane %v239_v16, %v134_v17  ;;  %v135_v28 = vrot.slane %v131_v25, %v134_v17 }
   0xb   :  { %41 = vst.msk [vmem:[#allocation2] sm:$0x7f] %vm40_vm1, %v36_v11  ;;  %v22_v31 = vadd.f32 %v242_v27, %v19_v26  ;;  %p281_p3 = por %p280_p2, %p279_p1 }
   0xd   :  { %p282_p4 = pnand %p281_p3, %p275_p0 }
  0x12   :  { %v45_v13 = vld [vmem:[#allocation2] sm:$0xff] }
  0x13   :  { %261 = vmatprep.mubr.msk.f32.mxu0 %vm37_vm0, %v45_v13 }
  0x14   :  { %262 = vmatmul.mubr.msk.f32.vlgmr.msra.gmra.mxu0 %vm37_vm0, %v46_v12 }
  0x82   :  { %v147_v35 = vpop.permute.xlu0 %146 }
  0xd4   :  { %v263_v29 = vpop.f32.mrf.mxu0 }
  0xd5   :  { %v141_v30 = vadd.f32 %v263_v29, %v140_v18 }
  0xd6   :  { %v122_v32 = vpop.f32.mrf.mxu0 }
  0xd7   :  { %v136_v33 = vadd.f32 %v135_v28, %v122_v32 }
  0xd9   :  { %v142_v34 = vadd.f32 %v136_v33, %v22_v31 }
  0xdb   :  { %265 = vmatpush3.xpose.msk.msra.mxu1 %vm37_vm0, %v142_v34 }
  0xde   :  { %267 = vmatmul.mubr.msk.f32.vlgmr.msra.gmra.mxu1 %vm37_vm0, %v238_v0 }
 0x19e   :  { %v218_v36 = vpop.f32.mrf.mxu1 }
 0x19f   :  { %v219_v37 = vadd.f32 %v218_v36, %v147_v35 }
 0x1a0   :  { %v268_v38 = vpop.f32.mrf.mxu1 }
 0x1a1   :  { %v222_v39 = vadd.f32 %v219_v37, %v141_v30 }
 0x1a3   :  { %223 = vst.msk [vmem:[#allocation3] sm:$0x7f] %vm40_vm1, %v222_v39 }
 0x1a4   :  { %285 = shalt.err (!%p282_p4)
}
 0x1a5   :  { %233 = dma.vmem_to_hbm [thread:$0]  %s231_s2, 128, %s361_s1, [#allocation4]  }
 0x1a6   :  { %294 = dma.done.wait [#allocation4], 128  }
 0x1a7   :  { %295 = vsyncadd [#allocation4], 4294967168 }
 0x1a8   :  { %237 = vsyncpa [#allocation4], 1 }

</bundles_post_ra>
